<compile_context>
chip_gen: v5e
topology: v5e:2x2
jax: 0.10.0
libtpu: 0.0.40
codegen_flags: <defaults>
</compile_context>

<pallas_src>
import math
import functools

import numpy as np
import jax
import jax.numpy as jnp
from jax.experimental import pallas as pl
from jax.experimental.pallas import tpu as pltpu


def _make_pe_table(d_model: int, max_len: int) -> jnp.ndarray:
    """Deterministic sinusoidal table, identical math to the torch __init__."""
    position = np.arange(max_len, dtype=np.float32)[:, None]                # [max_len, 1]
    div_term = np.exp(np.arange(0, d_model, 2, dtype=np.float32)
                      * (-math.log(10000.0) / d_model))                     # [d_model/2]
    pe = np.zeros((max_len, d_model), dtype=np.float32)
    pe[:, 0::2] = np.sin(position * div_term)
    pe[:, 1::2] = np.cos(position * div_term)
    return jnp.asarray(pe)                                                  # [max_len, d_model]


# ---------------------------------------------------------------------------
# Kernels: plain 2-D elementwise tiles, no broadcast, no in-kernel PRNG.
# ---------------------------------------------------------------------------
def _add_pe_kernel(x_ref, pe_ref, o_ref):
    o_ref[...] = (x_ref[...] + pe_ref[...]).astype(o_ref.dtype)


def _add_pe_dropout_kernel(p, x_ref, pe_ref, u_ref, o_ref):
    y = x_ref[...] + pe_ref[...]
    keep = u_ref[...] >= jnp.float32(p)                      # P(keep) = 1 - p
    scale = jnp.asarray(1.0 / (1.0 - p), dtype=y.dtype)
    o_ref[...] = jnp.where(keep, y * scale, jnp.zeros_like(y)).astype(o_ref.dtype)


def _choose_tile_s(seq_len: int, row_bytes: int, target_bytes: int = 1 << 20) -> int:
    """Sequence tile: ~1 MiB per buffer so double-buffered x/u/out/pe fit the
    default scoped-VMEM limit on every generation (16 MiB v5e, 32 MiB v6e/v7x,
    well under the 64 MiB physical VMEM of a v7x TensorCore)."""
    t = int(max(8, min(512, target_bytes // max(row_bytes, 1))))
    t -= t % 8
    if t >= seq_len:
        return seq_len                      # full dim always satisfies the (8,128) rule
    return max(t, 8)


@functools.partial(jax.jit, static_argnames=("p", "training"))
def positional_encoding_forward(x: jnp.ndarray,
                                pe_table: jnp.ndarray,
                                key: jax.Array,
                                *,
                                p: float = 0.1,
                                training: bool = True) -> jnp.ndarray:
    """x: [seq_len, batch, d_model]; pe_table: [max_len, d_model]; key: PRNG key."""
    S, B, D = x.shape
    pe = pe_table[:S].astype(x.dtype)                        # [S, D], x.dtype (halves PE traffic for bf16)
    apply_dropout = bool(training) and p > 0.0
    if apply_dropout and p >= 1.0:                           # avoid 1/(1-p) overflow edge case
        return jnp.zeros_like(x)

    itemsize = jnp.dtype(x.dtype).itemsize
    x2 = x.reshape(S, B * D)                                 # free row-major reshape

    lane_dense = (D % 128 == 0)
    if lane_dense:
        d_blk = D
        pe2 = pe                                             # [S, D]
        tS = _choose_tile_s(S, d_blk * itemsize)
        grid = (pl.cdiv(S, tS), B)                           # batch innermost -> PE tile stays resident
        xo_map = lambda s, b: (s, b)                         # block b = cols [b*D, (b+1)*D)
        pe_map = lambda s, b: (s, 0)                         # independent of b
    else:
        # Fallback when d_model is not a multiple of 128: one lane block spans
        # the full flattened (B*D) axis; PE is pre-tiled over batch so the
        # kernel stays a plain 2-D add.
        d_blk = B * D
        pe2 = jnp.tile(pe, (1, B))                           # [S, B*D]
        tS = _choose_tile_s(S, d_blk * itemsize)
        grid = (pl.cdiv(S, tS),)
        xo_map = lambda s: (s, 0)
        pe_map = lambda s: (s, 0)

    xo_spec = pl.BlockSpec((tS, d_blk), xo_map)
    pe_spec = pl.BlockSpec((tS, d_blk), pe_map)

    operands = [x2, pe2]
    in_specs = [xo_spec, pe_spec]
    pe_bytes = pe2.size * itemsize
    if apply_dropout:
        # TODO(synk): an in-kernel mask via pltpu.prng_seed/prng_random_bits
        # (seeded with program_id per block) would avoid streaming the mask from
        # HBM, but those primitives have no CPU/interpret lowering, so the mask
        # is drawn with jax.random in the wrapper. It also cannot bit-match
        # torch's RNG; statistics (keep prob 1-p, 1/(1-p) scaling) are identical.
        u = jax.random.uniform(key, x2.shape, dtype=jnp.float32)
        operands.append(u)
        in_specs.append(pl.BlockSpec((tS, d_blk), xo_map))
        kernel = functools.partial(_add_pe_dropout_kernel, float(p))
        flops = 3 * x.size
        bytes_accessed = 2 * x.size * itemsize + pe_bytes + u.size * 4
    else:
        kernel = _add_pe_kernel
        flops = x.size
        bytes_accessed = 2 * x.size * itemsize + pe_bytes

    out2 = pl.pallas_call(
        kernel,
        out_shape=jax.ShapeDtypeStruct(x2.shape, x.dtype),
        grid=grid,
        in_specs=in_specs,
        out_specs=xo_spec,
        compiler_params=pltpu.CompilerParams(
            dimension_semantics=("parallel",) * len(grid)),
        cost_estimate=pl.CostEstimate(
            flops=int(flops), transcendentals=0, bytes_accessed=int(bytes_accessed)),
    )(*operands)
    return out2.reshape(S, B, D)


if __name__ == "__main__":
    SEQ_LEN, BATCH, D_MODEL, MAX_LEN = 16, 2, 128, 64
    P_DROP = 0.1

    key = jax.random.PRNGKey(0)
    x_key, drop_key = jax.random.split(key)
    x = jax.random.normal(x_key, (SEQ_LEN, BATCH, D_MODEL), dtype=jnp.float32)
    pe_table = _make_pe_table(D_MODEL, MAX_LEN)
    pe_b = pe_table[:SEQ_LEN][:, None, :]                    # [S, 1, D] reference broadcast

    # Eval mode (dropout = identity): exact check against pure-JAX reference.
    out_eval = positional_encoding_forward(x, pe_table, drop_key, p=P_DROP, training=False)
    out_eval = jax.block_until_ready(out_eval)
    ref_eval = x + pe_b
    np.testing.assert_allclose(np.asarray(out_eval), np.asarray(ref_eval),
                               rtol=1e-6, atol=1e-6)

    # Training mode: inverted dropout with a mask drawn from the same key.
    out_train = positional_encoding_forward(x, pe_table, drop_key, p=P_DROP, training=True)
    out_train = jax.block_until_ready(out_train)
    u_ref = jax.random.uniform(drop_key, (SEQ_LEN, BATCH * D_MODEL), dtype=jnp.float32)
    u_ref = u_ref.reshape(SEQ_LEN, BATCH, D_MODEL)
    ref_train = jnp.where(u_ref >= P_DROP, (x + pe_b) * (1.0 / (1.0 - P_DROP)), 0.0)
    np.testing.assert_allclose(np.asarray(out_train), np.asarray(ref_train),
                               rtol=1e-5, atol=1e-5)
    assert out_train.shape == x.shape and out_train.dtype == x.dtype
    assert bool(jnp.all(jnp.isfinite(out_train)))

    print("KERNEL_OK")
</pallas_src>

<mosaic_0001>
module attributes {stable_mosaic.version = 11 : i64} {
  func.func @_add_pe_kernel(%arg0: i32, %arg1: i32, %arg2: memref<16x128xf32, #tpu.memory_space<vmem>>, %arg3: memref<16x128xf32, #tpu.memory_space<vmem>>, %arg4: memref<16x128xf32, #tpu.memory_space<vmem>>) attributes {dimension_semantics = [#tpu.dimension_semantics<parallel>, #tpu.dimension_semantics<parallel>], iteration_bounds = array<i64: 1, 2>, scalar_prefetch = 0 : i64, scratch_operands = 0 : i64, tpu.core_type = #tpu.core_type<tc>, window_params = [{transform_indices = @transform_0, window_bounds = array<i64: 16, 128>}, {transform_indices = @transform_1, window_bounds = array<i64: 16, 128>}, {transform_indices = @transform_2, window_bounds = array<i64: 16, 128>}]} {
    %c0 = arith.constant 0 : index
    %c0_0 = arith.constant 0 : index
    %0 = vector.load %arg2[%c0, %c0_0] : memref<16x128xf32, #tpu.memory_space<vmem>>, vector<16x128xf32>
    %c0_1 = arith.constant 0 : index
    %c0_2 = arith.constant 0 : index
    %1 = vector.load %arg3[%c0_1, %c0_2] : memref<16x128xf32, #tpu.memory_space<vmem>>, vector<16x128xf32>
    %2 = arith.addf %0, %1 : vector<16x128xf32>
    %c0_3 = arith.constant 0 : index
    %c0_4 = arith.constant 0 : index
    %3 = vector.load %arg4[%c0_3, %c0_4] : memref<16x128xf32, #tpu.memory_space<vmem>>, vector<16x128xf32>
    tpu.vector_store %arg4[%c0_3, %c0_4], %2 {strides = array<i32>} : memref<16x128xf32, #tpu.memory_space<vmem>>, vector<16x128xf32>,
    return
  }
  func.func @transform_0(%arg0: i32, %arg1: i32) -> (i32, i32) {
    %c0_i32 = arith.constant 0 : i32
    return %arg0, %arg1 : i32, i32
  }
  func.func @transform_1(%arg0: i32, %arg1: i32) -> (i32, i32) {
    %c0_i32 = arith.constant 0 : i32
    %c0_i32_0 = arith.constant 0 : i32
    return %arg0, %c0_i32 : i32, i32
  }
  func.func @transform_2(%arg0: i32, %arg1: i32) -> (i32, i32) {
    %c0_i32 = arith.constant 0 : i32
    return %arg0, %arg1 : i32, i32
  }
}

</mosaic_0001>

<bundles_post_ra>
// kernel: positional_encoding_forward.1
= control target key start
LH: loop header
LB: loop body
LE: loop exit
PB: predicated region body
PF: predicated region fallthrough
CT: control target
= control target key end

     0   :  { %s470_s9 = smov 0   ;;  %s472_s10 = smov 0   ;;  %s548_s0 = inlined_call_operand.vmem [shape: f32[16,256], index: 0, kind: input, shape index: {}]   ;;  %s549_s1 = inlined_call_operand.vmem [shape: f32[16,128], index: 1, kind: input, shape index: {}]   ;;  %s550_s2 = inlined_call_operand.vmem [shape: f32[16,256], index: 2, kind: output, shape index: {}]  }
   0x1   :  { %s474_s11 = smov 0   ;;  %s476_s12 = smov 0  }
   0x2   :  { %s478_s13 = smov 0  }
   0x3 LB: > { %s21_s14 = sadd.s32 1, %s449_s12  ;;  %s361_s15 = sadd.s32 4294967295, %s453_s13   ;;  %s453_s13 = sphi %s478_s13, %s12_s13   ;;  %s449_s12 = sphi %s476_s12, %s555_s12   ;;  %s445_s11 = sphi %s474_s11, %s554_s11   ;;  %s441_s10 = sphi %s472_s10, %s553_s10   ;;  %s437_s9 = sphi %s470_s9, %s552_s9  }
   0x4   : > { %p22_p0 = scmp.ge.s32.totalorder %s21_s14, 2  ;;  %p40_p1 = scmp.ne.s32.totalorder %s441_s10, %s437_s9 }
   0x5   : > { %p41_p2 = scmp.eq.s32.totalorder %s453_s13, 0  ;;  %p98_p4 = scmp.eq.s32.totalorder %s361_s15, 1 }
   0x6   : > { %s557_s14 = smov (%p22_p0, %s21_s14), 0  ;;  %s33_s17 = sadd.s32 1, %s441_s10 }
   0x7   : > { %p42_p3 = por %p41_p2, %p40_p1  ;;  %s29_s16 = ssub.s32 %s449_s12, %s557_s14 }
   0x8   : > { %p31_p5 = scmp.eq.s32.totalorder %s29_s16, 0  ;;  %p505_p6 = por %p98_p4, %p40_p1 }
   0x9   : > { %p365_p7 = scmp.ge.s32.totalorder %s453_s13, 2 }
   0xa   : > { %s510_s19 = scalar_select %p31_p5, %s441_s10, %s33_s17  }
   0xb   : > { %129 = sbr.rel (%p365_p7) target bundleno = 22 (0x16), region = 20 }
  0x10   : > { %132 = sbr.rel (!%p42_p3) target bundleno = 22 (0x16), region = 24  ;;  %s134_s20 = sand.u32 (%p42_p3), 1, %s441_s10  }
  0x11   : > { %s367_s21 = sshll.u32 (%p42_p3), %s449_s12, 3  ;;  %s366_s22 = sshll.u32 (%p42_p3), %s134_s20, 4 }
  0x12   : > { %s141_s25 = scalar_lea.vmem (%p42_p3), %s548_s0, %s367_s21  ;;  %s136_s26 = scalar_lea.vmem (%p42_p3), [#allocation2], %s366_s22 }
  0x13   : > { %v172_v0 = vld [vmem:[%s141_s25] sm:$0xff] (%p42_p3)  ;;  %v174_v1 = vld [vmem:[%s141_s25 + $0x10] sm:$0xff] (%p42_p3) }
  0x14   : > { %173 = vst [vmem:[%s136_s26] sm:$0xff] (%p42_p3), %v172_v0 }
  0x15   : > { %175 = vst [vmem:[%s136_s26 + $0x8] sm:$0xff] %v174_v1 }
  0x16 PF: > { %p368_p8 = scmp.ge.s32.totalorder %s453_s13, 1  ;;  %p180_p9 = scmp.lt.s32.totalorder %s453_s13, 3 }
  0x18   : > { %p181_p10 = pnand %p368_p8, %p180_p9 }
  0x19   : > { %s187_s27 = sand.u32 (!%p181_p10), 1, %s437_s9  }
  0x1a   : > { %184 = sbr.rel (%p181_p10) target bundleno = 45 (0x2d), region = 62  ;;  %s369_s28 = sshll.u32 (!%p181_p10), %s187_s27, 4 }
  0x1b   : > { %s189_s5 = scalar_lea.vmem (!%p181_p10), [#allocation2], %s369_s28  ;;  %s211_s6 = scalar_lea.vmem (!%p181_p10), [#allocation3], %s369_s28 }
  0x1f   : > { %v222_v2 = vld [vmem:[%s549_s1] sm:$0xff]  ;;  %v223_v3 = vld [vmem:[%s549_s1 + $0x8] sm:$0xff]  ;;  %s372_s7 = sshll.u32 (%p505_p6), %s445_s11, 3 }
  0x20   : > { %v220_v4 = vld [vmem:[%s189_s5] sm:$0xff]  ;;  %v221_v5 = vld [vmem:[%s189_s5 + $0x8] sm:$0xff]  ;;  %234 = sbr.rel (!%p505_p6) target bundleno = 45 (0x2d), region = 70  ;;  %s239_s15 = scalar_lea.vmem (%p505_p6), %s550_s2, %s372_s7 }
  0x21   : > { %v224_v6 = vadd.f32 %v222_v2, %v220_v4  ;;  %v225_v7 = vadd.f32 %v223_v3, %v221_v5 }
  0x23   : > { %226 = vst [vmem:[%s211_s6] sm:$0xff] %v224_v6 }
  0x24   : > { %227 = vst [vmem:[%s211_s6 + $0x8] sm:$0xff] %v225_v7 }
  0x2a   : > { %v270_v8 = vld [vmem:[%s211_s6] sm:$0xff] }
  0x2b   : > { %v272_v9 = vld [vmem:[%s211_s6 + $0x8] sm:$0xff]  ;;  %271 = vst [vmem:[%s239_s15] sm:$0xff] %v270_v8 }
  0x2c   : > { %273 = vst [vmem:[%s239_s15 + $0x10] sm:$0xff] %v272_v9 }
  0x2d PF: > { %s12_s13 = sadd.s32 1, %s453_s13   ;;  %s552_s9 = smov %s441_s10 }
  0x2e   : > { %p9_p11 = scmp.ge.s32.totalorder %s12_s13, 4   ;;  %s553_s10 = smov %s510_s19 }
  0x2f   : > { %s554_s11 = smov %s449_s12  ;;  %s555_s12 = smov %s557_s14 }
  0x30   :  { %11 = sbr.rel (!%p9_p11) target bundleno = 3 (0x3), region = 142 }

</bundles_post_ra>
